<compile_context>
chip_gen: v7x
topology: tpu7x:2x2x1
jax: 0.10.0
libtpu: 0.0.40
codegen_flags: <defaults>
</compile_context>

<pallas_src>
import functools

import jax
import jax.numpy as jnp
import numpy as np
from jax.experimental import pallas as pl
from jax.experimental.pallas import tpu as pltpu


_LANE = 128
# Squeezed block-dim sentinel (None is the legacy spelling of a squeezed dim).
_SQUEEZED = pl.Squeezed() if hasattr(pl, "Squeezed") else None


def _round_up(a, b):
    return ((a + b - 1) // b) * b


def _choose_hw_tile(C, HW, itemsize):
    """Pick a lane-dense (multiple-of-128) HW tile whose per-step VMEM is small.

    Budget ~24 MiB across double-buffered in/out blocks + f32 accumulator so the
    same tile fits v5e/v6e (128 MiB VMEM) and v7x (64 MiB per TensorCore) with
    plenty of headroom under an explicit 48 MiB scoped-VMEM limit.
    """
    budget = 24 * 1024 * 1024
    bytes_per_elem = max(int(itemsize), 4)            # accumulator is f32
    max_tile = (budget // (6 * C * bytes_per_elem)) // _LANE * _LANE
    tile = max(_LANE, min(max_tile, 2048))
    tile = min(tile, _round_up(HW, _LANE))            # no bigger than needed
    hw_pad = _round_up(HW, tile)
    return tile, hw_pad


def _pool_kernel(y_ref, p_ref, acc_ref, *, inv_hw):
    """Accumulate sum over HW tiles (VPU adds); emit mean (C, 1) at the last tile."""
    t = pl.program_id(1)

    @pl.when(t == 0)
    def _init():
        acc_ref[...] = jnp.zeros_like(acc_ref)

    # Per-lane partial sums; the single cross-lane (XLU) reduce happens below.
    acc_ref[...] += y_ref[...].astype(jnp.float32)          # (C, T_HW)

    @pl.when(t == pl.num_programs(1) - 1)
    def _finalize():
        s = jnp.sum(acc_ref[...], axis=-1, keepdims=True)   # (C, 1)
        p_ref[...] = s * inv_hw                             # multiply by precomputed 1/HW


def _scale_kernel(attn_ref, x_ref, o_ref):
    """out = x * attn, attn broadcast along the lane (HW) axis; no f32 upcast of x."""
    a = attn_ref[...].astype(o_ref.dtype)                   # (C, 1)
    o_ref[...] = x_ref[...] * a                             # (C, T_HW)


def eca_forward(x, y, conv_weight):
    """ECA forward. x, y: (B, C, H, W) NCHW; conv_weight: (3,) = Conv1d(1,1,3) taps."""
    B, C, H, W = x.shape
    assert y.shape == x.shape
    HW = H * W
    itemsize = jnp.dtype(x.dtype).itemsize
    t_hw, hw_pad = _choose_hw_tile(C, HW, itemsize)
    n_t = hw_pad // t_hw

    x2 = x.reshape(B, C, HW)
    y2 = y.reshape(B, C, HW)
    if hw_pad != HW:
        pad = ((0, 0), (0, 0), (0, hw_pad - HW))
        x2 = jnp.pad(x2, pad)     # zero-padded lanes scale to 0, sliced off below
        y2 = jnp.pad(y2, pad)     # zeros don't change the sum; divide by true HW

    vmem_limit = 48 * 1024 * 1024

    # Pass 1: global average pool of y over HW (reduction axis last, accumulator in VMEM).
    pooled = pl.pallas_call(
        functools.partial(_pool_kernel, inv_hw=np.float32(1.0 / HW)),
        out_shape=jax.ShapeDtypeStruct((B, C, 1), jnp.float32),
        grid_spec=pltpu.PrefetchScalarGridSpec(
            num_scalar_prefetch=0,
            grid=(B, n_t),
            in_specs=[pl.BlockSpec((_SQUEEZED, C, t_hw), lambda b, t: (b, 0, t))],
            out_specs=pl.BlockSpec((_SQUEEZED, C, 1), lambda b, t: (b, 0, 0)),
            scratch_shapes=[pltpu.VMEM((C, t_hw), jnp.float32)],
        ),
        compiler_params=pltpu.CompilerParams(
            dimension_semantics=("parallel", "arbitrary"),
            vmem_limit_bytes=vmem_limit,
        ),
    )(y2)

    # Tiny (B, C) stage in plain JAX: zero-padded 3-tap channel conv + sigmoid.
    p = pooled[:, :, 0]                                     # (B, C) f32
    p_pad = jnp.pad(p, ((0, 0), (1, 1)))
    conv = (conv_weight[0] * p_pad[:, :-2]
            + conv_weight[1] * p_pad[:, 1:-1]
            + conv_weight[2] * p_pad[:, 2:])
    attn = jax.nn.sigmoid(conv)[:, :, None].astype(jnp.float32)   # (B, C, 1)

    # Pass 2: scale x by attn, tiled over HW with lane-dense 128-multiple output blocks.
    out = pl.pallas_call(
        _scale_kernel,
        out_shape=jax.ShapeDtypeStruct((B, C, hw_pad), x.dtype),
        grid_spec=pltpu.PrefetchScalarGridSpec(
            num_scalar_prefetch=0,
            grid=(B, n_t),
            in_specs=[
                pl.BlockSpec((_SQUEEZED, C, 1), lambda b, t: (b, 0, 0)),      # attn
                pl.BlockSpec((_SQUEEZED, C, t_hw), lambda b, t: (b, 0, t)),   # x
            ],
            out_specs=pl.BlockSpec((_SQUEEZED, C, t_hw), lambda b, t: (b, 0, t)),
        ),
        compiler_params=pltpu.CompilerParams(
            dimension_semantics=("parallel", "parallel"),   # feed both TCs on v7x
            vmem_limit_bytes=vmem_limit,
        ),
    )(attn, x2)

    if hw_pad != HW:
        out = out[:, :, :HW]
    return out.reshape(B, C, H, W)


def eca_reference(x, y, conv_weight):
    """Pure-JAX reference mirroring the PyTorch module."""
    p = jnp.mean(y, axis=(2, 3))                            # (B, C)
    p_pad = jnp.pad(p, ((0, 0), (1, 1)))                    # zero pad channels
    conv = (conv_weight[0] * p_pad[:, :-2]
            + conv_weight[1] * p_pad[:, 1:-1]
            + conv_weight[2] * p_pad[:, 2:])                # (B, C)
    attn = jax.nn.sigmoid(conv)
    return x * attn[:, :, None, None]


if __name__ == "__main__":
    key = jax.random.PRNGKey(0)
    kx, ky, kw = jax.random.split(key, 3)

    B, C, H, W = 2, 4, 16, 16
    x = jax.random.normal(kx, (B, C, H, W), dtype=jnp.float32)
    y = jax.random.normal(ky, (B, C, H, W), dtype=jnp.float32)
    # Deterministic Conv1d(1, 1, 3, bias=False) weight, (out=1, in=1, k=3) -> (3,)
    conv_weight = jax.random.uniform(kw, (3,), dtype=jnp.float32,
                                     minval=-1.0, maxval=1.0)

    out = eca_forward(x, y, conv_weight)
    out = jax.block_until_ready(out)

    ref = eca_reference(x, y, conv_weight)
    if not np.allclose(np.asarray(out), np.asarray(ref), atol=1e-5, rtol=1e-5):
        raise AssertionError("Pallas ECA kernel does not match reference")

    print("KERNEL_OK")
</pallas_src>

<mosaic_0001>
module attributes {stable_mosaic.version = 11 : i64} {
  func.func @_pool_kernel(%arg0: i32, %arg1: i32, %arg2: memref<1x4x256xf32, #tpu.memory_space<vmem>>, %arg3: memref<1x4x1xf32, #tpu.memory_space<vmem>>, %arg4: memref<4x256xf32, #tpu.memory_space<vmem>>) attributes {dimension_semantics = [#tpu.dimension_semantics<parallel>, #tpu.dimension_semantics<arbitrary>], iteration_bounds = array<i64: 2, 1>, scalar_prefetch = 0 : i64, scratch_operands = 1 : i64, tpu.core_type = #tpu.core_type<tc>, window_params = [{transform_indices = @transform_0, window_bounds = array<i64: 1, 4, 256>}, {transform_indices = @transform_1, window_bounds = array<i64: 1, 4, 1>}]} {
    %c0_i32 = arith.constant 0 : i32
    %0 = arith.cmpi eq, %arg1, %c0_i32 : i32
    %1 = arith.extui %0 : i1 to i32
    %c0_i32_0 = arith.constant 0 : i32
    %2 = arith.cmpi ne, %1, %c0_i32_0 : i32
    scf.if %2 {
      %cst = arith.constant 0.000000e+00 : f32
      %11 = vector.broadcast %cst : f32 to vector<4x256xf32>
      %c0_9 = arith.constant 0 : index
      %c0_10 = arith.constant 0 : index
      %12 = vector.load %arg4[%c0_9, %c0_10] : memref<4x256xf32, #tpu.memory_space<vmem>>, vector<4x256xf32>
      tpu.vector_store %arg4[%c0_9, %c0_10], %11 {strides = array<i32>} : memref<4x256xf32, #tpu.memory_space<vmem>>, vector<4x256xf32>,
    } else {
    }
    %c0 = arith.constant 0 : index
    %c0_1 = arith.constant 0 : index
    %3 = vector.load %arg4[%c0, %c0_1] : memref<4x256xf32, #tpu.memory_space<vmem>>, vector<4x256xf32>
    %c0_2 = arith.constant 0 : index
    %c0_3 = arith.constant 0 : index
    %c0_4 = arith.constant 0 : index
    %4 = vector.load %arg2[%c0_2, %c0_3, %c0_4] : memref<1x4x256xf32, #tpu.memory_space<vmem>>, vector<1x4x256xf32>
    %5 = vector.shape_cast %4 : vector<1x4x256xf32> to vector<4x256xf32>
    %6 = arith.addf %3, %5 : vector<4x256xf32>
    %c0_5 = arith.constant 0 : index
    %c0_6 = arith.constant 0 : index
    %7 = vector.load %arg4[%c0_5, %c0_6] : memref<4x256xf32, #tpu.memory_space<vmem>>, vector<4x256xf32>
    tpu.vector_store %arg4[%c0_5, %c0_6], %6 {strides = array<i32>} : memref<4x256xf32, #tpu.memory_space<vmem>>, vector<4x256xf32>,
    %c0_i32_7 = arith.constant 0 : i32
    %8 = arith.cmpi eq, %arg1, %c0_i32_7 : i32
    %9 = arith.extui %8 : i1 to i32
    %c0_i32_8 = arith.constant 0 : i32
    %10 = arith.cmpi ne, %9, %c0_i32_8 : i32
    scf.if %10 {
      %c0_9 = arith.constant 0 : index
      %c0_10 = arith.constant 0 : index
      %11 = vector.load %arg4[%c0_9, %c0_10] : memref<4x256xf32, #tpu.memory_space<vmem>>, vector<4x256xf32>
      %cst = arith.constant dense<0.000000e+00> : vector<4xf32>
      %12 = vector.multi_reduction <add>, %11, %cst [1] : vector<4x256xf32> to vector<4xf32>
      %13 = vector.shape_cast %12 : vector<4xf32> to vector<4x1xf32>
      %cst_11 = arith.constant 3.906250e-03 : f32
      %14 = vector.broadcast %cst_11 : f32 to vector<4x1xf32>
      %15 = arith.mulf %13, %14 : vector<4x1xf32>
      %c0_12 = arith.constant 0 : index
      %c0_13 = arith.constant 0 : index
      %c0_14 = arith.constant 0 : index
      %16 = vector.load %arg3[%c0_12, %c0_13, %c0_14] : memref<1x4x1xf32, #tpu.memory_space<vmem>>, vector<1x4x1xf32>
      %17 = vector.shape_cast %16 : vector<1x4x1xf32> to vector<4x1xf32>
      %18 = vector.shape_cast %15 : vector<4x1xf32> to vector<1x4x1xf32>
      tpu.vector_store %arg3[%c0_12, %c0_13, %c0_14], %18 {strides = array<i32>} : memref<1x4x1xf32, #tpu.memory_space<vmem>>, vector<1x4x1xf32>,
    } else {
    }
    return
  }
  func.func @transform_0(%arg0: i32, %arg1: i32) -> (i32, i32, i32) {
    %c0_i32 = arith.constant 0 : i32
    %c0_i32_0 = arith.constant 0 : i32
    return %arg0, %c0_i32, %arg1 : i32, i32, i32
  }
  func.func @transform_1(%arg0: i32, %arg1: i32) -> (i32, i32, i32) {
    %c0_i32 = arith.constant 0 : i32
    %c0_i32_0 = arith.constant 0 : i32
    %c0_i32_1 = arith.constant 0 : i32
    return %arg0, %c0_i32, %c0_i32_0 : i32, i32, i32
  }
}

</mosaic_0001>

<bundles_post_ra>
// kernel: tpu_custom_call.1
= control target key start
LH: loop header
LB: loop body
LE: loop exit
PB: predicated region body
PF: predicated region fallthrough
CT: control target
= control target key end

     0   :  { %6 = vsyncpa [#allocation4], 0  ;;  %s538_s0 = inlined_call_operand.hbm [shape: f32[2,4,256], index: 0, kind: input, shape index: {}]   ;;  %s539_s1 = inlined_call_operand.vmem [shape: f32[2,4,1], index: 1, kind: output, shape index: {}]  }
   0x1   :  { %8 = vsyncpa [#allocation4 + $0x1], 0  ;;  %s413_s6 = smov 0   ;;  %s415_s7 = smov 0  }
   0x2   :  { %s417_s8 = smov 0   ;;  %s419_s9 = smov 0  }
   0x3   :  { %s421_s10 = smov 0   ;;  %s423_s11 = smov 0  }
   0x4 LB: > { %s251_s12 = sadd.s32 4294967295, %s400_s11   ;;  %s26_s13 = sadd.s32 1, %s396_s10  ;;  %s400_s11 = sphi %s423_s11, %s14_s11   ;;  %s396_s10 = sphi %s421_s10, %s549_s10   ;;  %s392_s9 = sphi %s419_s9, %s548_s9   ;;  %s388_s8 = sphi %s417_s8, %s547_s8   ;;  %s384_s7 = sphi %s415_s7, %s546_s7   ;;  %s380_s6 = sphi %s413_s6, %s545_s6  }
   0x5   : > { %p28_p0 = scmp.ge.s32.totalorder %s26_s13, 2  ;;  %s35_s14 = sadd.s32 1, %s388_s8 }
   0x6   : > { %p42_p1 = scmp.ne.s32.totalorder %s388_s8, %s384_s7  ;;  %p43_p2 = scmp.eq.s32.totalorder %s400_s11, 0 }
   0x7   : > { %s551_s13 = smov (%p28_p0, %s26_s13), 0  ;;  %p48_p4 = scmp.ne.s32.totalorder %s384_s7, %s380_s6 }
   0x8   : > { %p449_p3 = por %p43_p2, %p42_p1  ;;  %s30_s16 = ssub.s32 %s396_s10, %s551_s13 }
   0x9   : > { %p49_p5 = scmp.eq.s32.totalorder %s251_s12, 0  ;;  %p33_p6 = scmp.eq.s32.totalorder %s30_s16, 0 }
   0xa   : > { %p270_p8 = scmp.lt.s32.totalorder %s400_s11, 2  ;;  %s98_s19 = sand.u32 1, %s388_s8  }
   0xb   : > { %p456_p7 = por %p49_p5, %p48_p4  ;;  %s263_s20 = sshll.u32 %s396_s10, 7 }
   0xc   : > { %s462_s18 = scalar_select %p33_p6, %s388_s8, %s35_s14  }
   0xd   : > { %s255_s21 = sshll.u32 %s98_s19, 3  ;;  %s469_s24 = scalar_lea.hbm %s538_s0, %s263_s20 }
   0xe   : > { %s102_s25 = scalar_lea.vmem [#allocation3], %s255_s21  ;;  %p473_p9 = pnand %p270_p8, %p449_p3 }
   0xf   : > { %s112_s26 = sshll.u32 %s102_s25, 4  ;;  %s99_s28 = scalar_lea.sflag [#allocation4], %s98_s19  ;;  %s477_s26 = int_to_ptr.vmem [resolvable:$true] %s112_s26 }
  0x10   : > { %s320_s29 = scalar_lea.hbm %s469_s24, 128  ;;  %p322_p13 = pneg %p473_p9 }
  0x11   : > { %p321_p12 = scmp.ne.s32.totalorder %s469_s24, %s320_s29  ;;  %s325_s3 = scalar_lea.hbm %s538_s0, 256 }
  0x12   : > { %p326_p2 = scmp.lt.u32.totalorder %s469_s24, %s538_s0  ;;  %p327_p3 = scmp.lt.u32.totalorder %s325_s3, %s320_s29 }
  0x13   : > { %p323_p0 = pnand %p322_p13, %p321_p12  ;;  %p329_p5 = scmp.lt.u32.totalorder %s320_s29, %s469_s24 }
  0x14   : > { %p328_p4 = por %p327_p3, %p326_p2 }
  0x15   : > { %p324_p1 = pneg %p323_p0 }
  0x16   : > { %p330_p6 = por %p329_p5, %p328_p4 }
  0x18   : > { %p331_p8 = pnand %p330_p6, %p324_p1 }
  0x1a   : > { %334 = shalt.err (!%p331_p8)
}
  0x1b   : > { %s335_s6 = scalar_lea.vmem %s477_s26, 128  ;;  %s402_s12 = smov [#allocation3]  }
  0x1c   : > { %p336_p12 = scmp.ne.s32.totalorder %s477_s26, %s335_s6  ;;  %s340_s14 = sshll.u32 %s402_s12, 4  ;;  %s341_s14 = int_to_ptr.vmem [resolvable:$false] %s340_s14 }
  0x1d   : > { %s342_s15 = scalar_lea.vmem %s341_s14, 256  ;;  %p343_p11 = scmp.lt.s32.totalorder %s477_s26, %s341_s14 }
  0x1e   : > { %p338_p0 = pnand %p336_p12, %p322_p13  ;;  %p344_p2 = scmp.lt.s32.totalorder %s342_s15, %s335_s6 }
  0x20   : > { %p339_p10 = pneg %p338_p0  ;;  %p345_p3 = por %p344_p2, %p343_p11 }
  0x22   : > { %p346_p4 = pnand %p345_p3, %p339_p10 }
  0x24   : > { %349 = shalt.err (!%p346_p4)
}
  0x25   : > { %269 = dma.hbm_to_vmem [thread:$0]  (!%p473_p9), %s469_s24, 128, %s477_s26, %s99_s28  }
  0x26   : > { %p543_p1 = scmp.lt.s32.totalorder %s400_s11, 3  ;;  %p544_p5 = scmp.ge.s32.totalorder %s400_s11, 1 }
  0x28   : > { %p118_p13 = pnand %p544_p5, %p543_p1 }
  0x29   : > { %s123_s16 = sand.u32 (!%p118_p13), 1, %s384_s7  }
  0x2a   : > { %121 = sbr.rel (%p118_p13) target bundleno = 201 (0xc9), region = 24  ;;  %s259_s19 = sshll.u32 (!%p118_p13), %s123_s16, 3 }
  0x2b   : > { %s124_s20 = scalar_lea.sflag (!%p118_p13), [#allocation4], %s123_s16  ;;  %s127_s21 = scalar_lea.vmem (!%p118_p13), [#allocation3], %s259_s19 }
  0x31   : > { %375 = dma.done.wait (%p456_p7), %s124_s20, 128  }
  0x32   : > { %377 = vsyncadd (%p456_p7), %s124_s20, 4294967168  ;;  %vm166_vm0 = vcmask 1043456   ;;  %v156_v0 = vld [vmem:[%s127_s21] sm:$0xff]  ;;  %p146_p9 = scmp.lt.s32.totalorder %s392_s9, 1  ;;  %vm173_vm1 = vcmask 3072  }
  0x33   : > { %v164_v1 = vcombine.high %v156_v0, %v156_v0  ;;  %v167_v2 = vsel %vm166_vm0, %v156_v0, 0.0 }
  0x34   : > { %s553_s9 = smov (!%p146_p9, %s392_s9), 1 }
  0x35   : > { %v168_v3 = vsel %vm166_vm0, %v164_v1, 0.0  ;;  %s260_s22 = sshll.u32 %s553_s9, 2 }
  0x36   : > { %v169_v4 = vadd.f32 %v168_v3, %v167_v2  ;;  %s149_s25 = scalar_lea.vmem %s539_s1, %s260_s22 }
  0x38   : > { %170 = vadd.xlane.f32.xlu0 %v169_v4 }
  0xc5   : > { %v171_v5 = vpop.xlane.xlu0 %170 }
  0xc6   : > { %v172_v6 = vmul.f32 0.00390625, %v171_v5 }
  0xc8   : > { %174 = vst.msk [vmem:[%s149_s25] sm:$0xf] %vm173_vm1, %v172_v6 }
  0xc9 PF: > { %s14_s11 = sadd.s32 1, %s400_s11   ;;  %s545_s6 = smov %s384_s7 }
  0xca   : > { %p11_p7 = scmp.ge.s32.totalorder %s14_s11, 4   ;;  %s546_s7 = smov %s388_s8 }
  0xcb   : > { %s547_s8 = smov %s462_s18  ;;  %s548_s9 = smov %s396_s10 }
  0xcc   : > { %s549_s10 = smov %s551_s13  ;;  %13 = sbr.rel (!%p11_p7) target bundleno = 4 (0x4), region = 72 }
  0xd3   :  { %194 = vsyncpa [#allocation4], 1 }
  0xd4   :  { %196 = vsyncpa [#allocation4 + $0x1], 1 }

</bundles_post_ra>
